<compile_context>
chip_gen: v5e
topology: v5e:2x2
jax: 0.10.0
libtpu: 0.0.40
codegen_flags: <defaults>
</compile_context>

<pallas_src>
import jax
import jax.numpy as jnp
from jax.experimental import pallas as pl
from jax.experimental.pallas import tpu as pltpu


def addmm_kernel(p_ref, o_ref):
    # p_ref: (6,) f32 SMEM = [x, w00, w01, w10, w11, b]
    # o_ref: (2,1) f32 SMEM output (v1 = x + W @ broadcast(b, (2,1)))
    x = p_ref[0]
    b = p_ref[5]
    o_ref[0, 0] = x + b * (p_ref[1] + p_ref[2])   # row 0
    o_ref[1, 0] = x + b * (p_ref[3] + p_ref[4])   # row 1


def model_forward(x1, weight, bias):
    """x1: (1,1,1,1) f32, weight: (2,2) f32, bias: (1,) f32  ->  (2,1) f32."""
    # Pack all 6 scalars into a single 1-D SMEM operand (fuses to one tiny HLO in XLA).
    packed = jnp.concatenate(
        [x1.reshape(-1), weight.reshape(-1), bias.reshape(-1)]
    ).astype(jnp.float32)                              # (6,)

    v1 = pl.pallas_call(
        addmm_kernel,
        out_shape=jax.ShapeDtypeStruct((2, 1), jnp.float32),
        in_specs=[pl.BlockSpec(memory_space=pltpu.SMEM)],
        out_specs=pl.BlockSpec(memory_space=pltpu.SMEM),
        cost_estimate=pl.CostEstimate(flops=6, transcendentals=0, bytes_accessed=32),
    )(packed)

    # torch.cat((v1,), 0) is the identity -> return v1 directly (no extra HLO).
    return v1


if __name__ == "__main__":
    key = jax.random.PRNGKey(0)
    kx, kw, kb = jax.random.split(key, 3)

    # deterministic "parameters" (torch.Tensor(...) is uninitialized; we seed them)
    x1 = jax.random.normal(kx, (1, 1, 1, 1), dtype=jnp.float32)
    weight = jax.random.normal(kw, (2, 2), dtype=jnp.float32)
    bias = jax.random.normal(kb, (1,), dtype=jnp.float32)

    out = model_forward(x1, weight, bias)
    out = jax.block_until_ready(out)

    # reference check in plain JAX (same approximated semantics)
    ref = x1.reshape(()) + weight @ jnp.broadcast_to(bias.reshape(1, 1), (2, 1))
    assert out.shape == (2, 1), out.shape
    assert jnp.allclose(out, ref, atol=1e-5), (out, ref)

    print("KERNEL_OK")
</pallas_src>

<mosaic_0001>
module attributes {stable_mosaic.version = 11 : i64} {
  func.func @addmm_kernel(%arg0: memref<6xf32, #tpu.memory_space<smem>>, %arg1: memref<2x1xf32, #tpu.memory_space<smem>>) attributes {dimension_semantics = [], scalar_prefetch = 0 : i64, scratch_operands = 0 : i64, tpu.core_type = #tpu.core_type<tc>} {
    %c0 = arith.constant 0 : index
    %0 = memref.load %arg0[%c0] : memref<6xf32, #tpu.memory_space<smem>>
    %c5 = arith.constant 5 : index
    %1 = memref.load %arg0[%c5] : memref<6xf32, #tpu.memory_space<smem>>
    %c1 = arith.constant 1 : index
    %2 = memref.load %arg0[%c1] : memref<6xf32, #tpu.memory_space<smem>>
    %c2 = arith.constant 2 : index
    %3 = memref.load %arg0[%c2] : memref<6xf32, #tpu.memory_space<smem>>
    %4 = arith.addf %2, %3 : f32
    %5 = arith.mulf %1, %4 : f32
    %6 = arith.addf %0, %5 : f32
    %c0_0 = arith.constant 0 : index
    %c0_1 = arith.constant 0 : index
    %7 = memref.load %arg1[%c0_0, %c0_1] : memref<2x1xf32, #tpu.memory_space<smem>>
    memref.store %6, %arg1[%c0_0, %c0_1] : memref<2x1xf32, #tpu.memory_space<smem>>
    %c3 = arith.constant 3 : index
    %8 = memref.load %arg0[%c3] : memref<6xf32, #tpu.memory_space<smem>>
    %c4 = arith.constant 4 : index
    %9 = memref.load %arg0[%c4] : memref<6xf32, #tpu.memory_space<smem>>
    %10 = arith.addf %8, %9 : f32
    %11 = arith.mulf %1, %10 : f32
    %12 = arith.addf %0, %11 : f32
    %c1_2 = arith.constant 1 : index
    %c0_3 = arith.constant 0 : index
    %13 = memref.load %arg1[%c1_2, %c0_3] : memref<2x1xf32, #tpu.memory_space<smem>>
    memref.store %12, %arg1[%c1_2, %c0_3] : memref<2x1xf32, #tpu.memory_space<smem>>
    return
  }
}

</mosaic_0001>

<bundles_post_ra>
// kernel: tpu_custom_call.1
= control target key start
LH: loop header
LB: loop body
LE: loop exit
PB: predicated region body
PF: predicated region fallthrough
CT: control target
= control target key end

     0   :  { %6 = vsyncpa [#allocation3], 0  ;;  %s107_s0 = inlined_call_operand.hbm [shape: f32[6], index: 0, kind: input, shape index: {}]   ;;  %s108_s1 = inlined_call_operand.vmem [shape: f32[2,1], index: 1, kind: output, shape index: {}]  }
   0x1   :  { %7 = vsyncpa [#allocation4], 0  ;;  %s13_s8 = sshll.u32 %s107_s0, 4  ;;  %s89_s9 = smov [#allocation2]   ;;  %s14_s8 = int_to_ptr.hbm [resolvable:$true] %s13_s8 }
   0x2   :  { %16 = dma.hbm_to_smem %s14_s8, 16, %s89_s9, [#allocation3]  }
   0x3   :  { %85 = dma.done.wait [#allocation3], 16  }
   0x4   :  { %86 = vsyncadd [#allocation3], 4294967280 }
   0x5   :  { %21 = sfence }
   0x6   :  { %s22_s10 = sld [smem:[#allocation2]]  ;;  %s43_s21 = sshll.u32 %s108_s1, 4  ;;  %s44_s21 = int_to_ptr.vmem [resolvable:$true] %s43_s21 }
   0x7   :  { %s54_s11 = sld [smem:[#allocation2 + $0x5]]  ;;  %s90_s24 = smov [#allocation5]  }
   0x8   :  { %s55_s12 = sld [smem:[#allocation2 + $0x1]] }
   0x9   :  { %s56_s13 = sld [smem:[#allocation2 + $0x2]] }
   0xa   :  { %s57_s14 = sld [smem:[#allocation2 + $0x3]] }
   0xb   :  { %s58_s15 = sld [smem:[#allocation2 + $0x4]] }
   0xf   :  { %s26_s16 = sadd.f32 %s56_s13, %s55_s12 }
  0x11   :  { %s27_s17 = smul.f32 %s54_s11, %s26_s16  ;;  %s33_s18 = sadd.f32 %s58_s15, %s57_s14 }
  0x13   :  { %s28_s0 = sadd.f32 %s27_s17, %s22_s10  ;;  %s34_s22 = smul.f32 %s54_s11, %s33_s18 }
  0x15   :  { %30 = sst [smem:[#allocation5]] %s28_s0 }
  0x16   :  { %s35_s23 = sadd.f32 %s34_s22, %s22_s10 }
  0x18   :  { %37 = sst [smem:[#allocation5 + $0x80]] %s35_s23 }
  0x19   :  { %46 = dma.smem_to_vmem %s90_s24, 32, %s44_s21, [#allocation4]  }
  0x1a   :  { %87 = dma.done.wait [#allocation4], 32  }
  0x1b   :  { %88 = vsyncadd [#allocation4], 4294967264 }
  0x1c   :  { %51 = sfence }
  0x1d   :  { %52 = vsyncpa [#allocation3], 1 }
  0x1e   :  { %53 = vsyncpa [#allocation4], 1 }

</bundles_post_ra>
